<compile_context>
chip_gen: v7x
topology: tpu7x:2x2x1
jax: 0.10.0
libtpu: 0.0.40
codegen_flags: <defaults>
</compile_context>

<pallas_src>
import jax
import jax.numpy as jnp
from jax.experimental import pallas as pl
from jax.experimental.pallas import tpu as pltpu


def attention_kernel(x_ref, w_ref, b_ref, u_ref, out_ref):
    # x_ref:  (TB, S, D)  input activations for TB sentences
    # w_ref:  (D, D)      fc weight (applied as x @ w)
    # b_ref:  (1, D)      fc bias
    # u_ref:  (D, 1)      attention vector, pre-shaped as a column
    # out_ref:(TB, D)     pooled output
    TB, S, D = x_ref.shape

    x = x_ref[...]                                           # (TB, S, D)
    x2 = x.reshape(TB * S, D)                                # all rows of this tile

    # h = tanh(fc(x)) : one big (TB*S, D) @ (D, D) MXU matmul
    h = jnp.tanh(
        jnp.dot(x2, w_ref[...], preferred_element_type=jnp.float32) + b_ref[...]
    )                                                        # (TB*S, D)

    # tmp = h @ u : MXU matmul against the attention vector
    logits = jnp.dot(h, u_ref[...], preferred_element_type=jnp.float32)  # (TB*S, 1)
    logits = logits.reshape(TB, S, 1)

    # mask = (x != 0)[:, :, 0]   (computed on the raw input, as in PyTorch)
    mask = x[:, :, 0:1] != 0.0                               # (TB, S, 1)
    masked = jnp.where(mask, logits, jnp.float32(-1e32))     # (TB, S, 1)

    # per-sentence softmax over the sequence axis
    m = jnp.max(masked, axis=1, keepdims=True)               # (TB, 1, 1)
    e = jnp.exp(masked - m)                                  # (TB, S, 1)
    denom = jnp.sum(e, axis=1, keepdims=True)                # (TB, 1, 1)
    alpha = e * pl.reciprocal(denom, approx=True)            # (TB, S, 1)

    # out = (x * alpha).sum(dim=1)
    out_ref[...] = jnp.sum(x * alpha, axis=1).astype(out_ref.dtype)   # (TB, D)


def attention_layer(x, w_fc, b_fc, u, *, batch_tile=None):
    """x: (B, S, D) float32. Returns (B, D) float32 (AttentionLayer.forward)."""
    B, S, D = x.shape

    if batch_tile is None:
        # Aim for ~256 rows (TB*S) per grid step so the MXU sees a full tile,
        # while keeping uniform blocks (TB divides B).
        batch_tile = max(1, min(B, pl.cdiv(256, S)))
        while B % batch_tile != 0:
            batch_tile -= 1
    TB = batch_tile
    grid = (B // TB,)

    b_2d = b_fc.reshape(1, D)
    u_col = u.reshape(D, 1)

    grid_spec = pltpu.PrefetchScalarGridSpec(
        num_scalar_prefetch=0,
        grid=grid,
        in_specs=[
            pl.BlockSpec((TB, S, D), lambda i: (i, 0, 0)),   # activations tile
            pl.BlockSpec((D, D), lambda i: (0, 0)),          # fc weight (constant)
            pl.BlockSpec((1, D), lambda i: (0, 0)),          # fc bias
            pl.BlockSpec((D, 1), lambda i: (0, 0)),          # attention vector u
        ],
        out_specs=pl.BlockSpec((TB, D), lambda i: (i, 0)),   # lane-dense output block
    )

    return pl.pallas_call(
        attention_kernel,
        out_shape=jax.ShapeDtypeStruct((B, D), jnp.float32),
        grid_spec=grid_spec,
        compiler_params=pltpu.CompilerParams(
            dimension_semantics=("parallel",)),
    )(x, w_fc, b_2d, u_col)


def _reference(x, w_fc, b_fc, u):
    # Pure-JAX transcription of AttentionLayer.forward
    mask = x[:, :, 0] != 0.0                                 # (B, S)
    h = jnp.tanh(x @ w_fc + b_fc)                            # (B, S, D)
    tmp = h @ u                                              # (B, S)
    masked = jnp.where(mask, tmp, -1e32)
    alpha = jax.nn.softmax(masked, axis=1)[..., None]        # (B, S, 1)
    return jnp.sum(x * alpha, axis=1)                        # (B, D)


if __name__ == "__main__":
    # Small shapes consistent with the module: batch=4, seq=16, input_dim=128
    # (input_dim chosen lane-dense; a single grid step covers the whole batch).
    B, S, D = 4, 16, 128

    key = jax.random.PRNGKey(0)
    kx, kw, kb, ku = jax.random.split(key, 4)

    x = jax.random.normal(kx, (B, S, D), jnp.float32)
    x = x.at[:, S - 4:, :].set(0.0)          # padded (all-zero) trailing positions
    w_fc = jax.random.normal(kw, (D, D), jnp.float32) * 0.1
    b_fc = jax.random.normal(kb, (D,), jnp.float32) * 0.1
    u = jax.random.normal(ku, (D,), jnp.float32)

    out = attention_layer(x, w_fc, b_fc, u)
    out = jax.block_until_ready(out)

    ref = _reference(x, w_fc, b_fc, u)
    assert out.shape == (B, D)
    assert jnp.allclose(out, ref, atol=2e-3, rtol=2e-3), "mismatch vs reference"

    print("KERNEL_OK")
</pallas_src>

<mosaic_0001>
module attributes {stable_mosaic.version = 11 : i64} {
  func.func @attention_kernel(%arg0: i32, %arg1: memref<4x16x128xf32, #tpu.memory_space<vmem>>, %arg2: memref<128x128xf32, #tpu.memory_space<vmem>>, %arg3: memref<1x128xf32, #tpu.memory_space<vmem>>, %arg4: memref<128x1xf32, #tpu.memory_space<vmem>>, %arg5: memref<4x128xf32, #tpu.memory_space<vmem>>) attributes {dimension_semantics = [#tpu.dimension_semantics<parallel>], iteration_bounds = array<i64: 1>, scalar_prefetch = 0 : i64, scratch_operands = 0 : i64, tpu.core_type = #tpu.core_type<tc>, window_params = [{transform_indices = @transform_0, window_bounds = array<i64: 4, 16, 128>}, {pipeline_mode = #tpu.pipeline_mode<synchronous>, transform_indices = @transform_1, window_bounds = array<i64: 128, 128>}, {pipeline_mode = #tpu.pipeline_mode<synchronous>, transform_indices = @transform_2, window_bounds = array<i64: 1, 128>}, {pipeline_mode = #tpu.pipeline_mode<synchronous>, transform_indices = @transform_3, window_bounds = array<i64: 128, 1>}, {transform_indices = @transform_4, window_bounds = array<i64: 4, 128>}]} {
    %c0 = arith.constant 0 : index
    %c0_0 = arith.constant 0 : index
    %c0_1 = arith.constant 0 : index
    %0 = vector.load %arg1[%c0, %c0_0, %c0_1] : memref<4x16x128xf32, #tpu.memory_space<vmem>>, vector<4x16x128xf32>
    %1 = vector.shape_cast %0 : vector<4x16x128xf32> to vector<64x128xf32>
    %c0_2 = arith.constant 0 : index
    %c0_3 = arith.constant 0 : index
    %2 = vector.load %arg2[%c0_2, %c0_3] : memref<128x128xf32, #tpu.memory_space<vmem>>, vector<128x128xf32>
    %cst = arith.constant dense<0.000000e+00> : vector<64x128xf32>
    %3 = tpu.matmul %1, %2, %cst {dimension_numbers = #tpu.dot_dimension_numbers<[1], [0], [0], [1], [0, 0, 1, 1], [], []>} : vector<64x128xf32>, vector<128x128xf32>, vector<64x128xf32> -> vector<64x128xf32>
    %c0_4 = arith.constant 0 : index
    %c0_5 = arith.constant 0 : index
    %4 = vector.load %arg3[%c0_4, %c0_5] : memref<1x128xf32, #tpu.memory_space<vmem>>, vector<1x128xf32>
    %5 = vector.broadcast %4 : vector<1x128xf32> to vector<64x128xf32>
    %6 = arith.addf %3, %5 : vector<64x128xf32>
    %7 = math.tanh %6 : vector<64x128xf32>
    %c0_6 = arith.constant 0 : index
    %c0_7 = arith.constant 0 : index
    %8 = vector.load %arg4[%c0_6, %c0_7] : memref<128x1xf32, #tpu.memory_space<vmem>>, vector<128x1xf32>
    %cst_8 = arith.constant dense<0.000000e+00> : vector<64x1xf32>
    %9 = tpu.matmul %7, %8, %cst_8 {dimension_numbers = #tpu.dot_dimension_numbers<[1], [0], [0], [1], [0, 0, 1, 1], [], []>} : vector<64x128xf32>, vector<128x1xf32>, vector<64x1xf32> -> vector<64x1xf32>
    %10 = vector.shape_cast %9 : vector<64x1xf32> to vector<4x16x1xf32>
    %11 = vector.extract_strided_slice %0 {offsets = [0, 0, 0], sizes = [4, 16, 1], strides = [1, 1, 1]} : vector<4x16x128xf32> to vector<4x16x1xf32>
    %cst_9 = arith.constant 0.000000e+00 : f32
    %12 = vector.broadcast %cst_9 : f32 to vector<4x16x1xf32>
    %13 = arith.cmpf one, %11, %12 : vector<4x16x1xf32>
    %cst_10 = arith.constant -1.000000e+32 : f32
    %14 = vector.broadcast %cst_10 : f32 to vector<4x16x1xf32>
    %15 = arith.select %13, %10, %14 : vector<4x16x1xi1>, vector<4x16x1xf32>
    %cst_11 = arith.constant dense<0xFF800000> : vector<4x1xf32>
    %16 = vector.multi_reduction <maximumf>, %15, %cst_11 [1] : vector<4x16x1xf32> to vector<4x1xf32>
    %17 = vector.shape_cast %16 : vector<4x1xf32> to vector<4x1x1xf32>
    %18 = vector.broadcast %17 : vector<4x1x1xf32> to vector<4x16x1xf32>
    %19 = arith.subf %15, %18 : vector<4x16x1xf32>
    %20 = math.exp %19 : vector<4x16x1xf32>
    %cst_12 = arith.constant dense<0.000000e+00> : vector<4x1xf32>
    %21 = vector.multi_reduction <add>, %20, %cst_12 [1] : vector<4x16x1xf32> to vector<4x1xf32>
    %22 = vector.shape_cast %21 : vector<4x1xf32> to vector<4x1x1xf32>
    %23 = tpu.reciprocal %22 {approx = true} : vector<4x1x1xf32> -> vector<4x1x1xf32>
    %24 = vector.broadcast %23 : vector<4x1x1xf32> to vector<4x16x1xf32>
    %25 = arith.mulf %20, %24 : vector<4x16x1xf32>
    %26 = vector.broadcast %25 : vector<4x16x1xf32> to vector<4x16x128xf32>
    %27 = arith.mulf %0, %26 : vector<4x16x128xf32>
    %cst_13 = arith.constant dense<0.000000e+00> : vector<4x128xf32>
    %28 = vector.multi_reduction <add>, %27, %cst_13 [1] : vector<4x16x128xf32> to vector<4x128xf32>
    %c0_14 = arith.constant 0 : index
    %c0_15 = arith.constant 0 : index
    %29 = vector.load %arg5[%c0_14, %c0_15] : memref<4x128xf32, #tpu.memory_space<vmem>>, vector<4x128xf32>
    tpu.vector_store %arg5[%c0_14, %c0_15], %28 {strides = array<i32>} : memref<4x128xf32, #tpu.memory_space<vmem>>, vector<4x128xf32>,
    return
  }
  func.func @transform_0(%arg0: i32) -> (i32, i32, i32) {
    %c0_i32 = arith.constant 0 : i32
    %c0_i32_0 = arith.constant 0 : i32
    %c0_i32_1 = arith.constant 0 : i32
    return %arg0, %c0_i32, %c0_i32_0 : i32, i32, i32
  }
  func.func @transform_1(%arg0: i32) -> (i32, i32) {
    %c0_i32 = arith.constant 0 : i32
    %c0_i32_0 = arith.constant 0 : i32
    %c0_i32_1 = arith.constant 0 : i32
    return %c0_i32, %c0_i32_0 : i32, i32
  }
  func.func @transform_2(%arg0: i32) -> (i32, i32) {
    %c0_i32 = arith.constant 0 : i32
    %c0_i32_0 = arith.constant 0 : i32
    %c0_i32_1 = arith.constant 0 : i32
    return %c0_i32, %c0_i32_0 : i32, i32
  }
  func.func @transform_3(%arg0: i32) -> (i32, i32) {
    %c0_i32 = arith.constant 0 : i32
    %c0_i32_0 = arith.constant 0 : i32
    %c0_i32_1 = arith.constant 0 : i32
    return %c0_i32, %c0_i32_0 : i32, i32
  }
  func.func @transform_4(%arg0: i32) -> (i32, i32) {
    %c0_i32 = arith.constant 0 : i32
    %c0_i32_0 = arith.constant 0 : i32
    return %arg0, %c0_i32 : i32, i32
  }
}

</mosaic_0001>

<bundles_post_ra>
// kernel: tpu_custom_call.1
= control target key start
LH: loop header
LB: loop body
LE: loop exit
PB: predicated region body
PF: predicated region fallthrough
CT: control target
= control target key end

     0   :  { %9 = vsyncpa [#allocation3], 0  ;;  %s1030_s0 = inlined_call_operand.hbm [shape: f32[4,16,128], index: 0, kind: input, shape index: {}]   ;;  %s1031_s1 = inlined_call_operand.vmem [shape: f32[128,128], index: 1, kind: input, shape index: {}]   ;;  %s1032_s2 = inlined_call_operand.vmem [shape: f32[1,128], index: 2, kind: input, shape index: {}]   ;;  %s1033_s3 = inlined_call_operand.vmem [shape: f32[128,1], index: 3, kind: input, shape index: {}]   ;;  %s1034_s4 = inlined_call_operand.hbm [shape: f32[4,128], index: 4, kind: output, shape index: {}]  }
   0x1   :  { %10 = vsyncpa [#allocation4], 0  ;;  %s821_s15 = smov [#allocation2]   ;;  %s773_s19 = scalar_lea.hbm %s1030_s0, 1024 }
   0x2   :  { %s16_s16 = sshll.u32 %s821_s15, 4  ;;  %p774_p0 = scmp.ne.s32.totalorder %s1030_s0, %s773_s19  ;;  %s17_s16 = int_to_ptr.vmem [resolvable:$true] %s16_s16 }
   0x3   :  { %p777_p1 = scmp.lt.u32.totalorder %s773_s19, %s1030_s0 }
   0x5   :  { %p779_p2 = pnand %p777_p1, %p774_p0 }
   0x7   :  { %782 = shalt.err (!%p779_p2)
}
   0x8   :  { %s783_s24 = scalar_lea.vmem %s17_s16, 1024  ;;  %p788_p4 = scmp.lt.s32.totalorder %s17_s16, %s17_s16 }
   0x9   :  { %p784_p3 = scmp.ne.s32.totalorder %s17_s16, %s783_s24  ;;  %p789_p5 = scmp.lt.s32.totalorder %s783_s24, %s783_s24 }
   0xb   :  { %p790_p6 = por %p789_p5, %p788_p4 }
   0xd   :  { %p791_p7 = pnand %p790_p6, %p784_p3 }
   0xf   :  { %794 = shalt.err (!%p791_p7)
}
  0x10   :  { %s822_s25 = smov 128   ;;  %s823_s26 = smov 8  }
  0x11   :  { %22 = dma.hbm_to_vmem [thread:$0]  %s1030_s0, 1024, %s17_s16, [#allocation3], %s822_s25, %s822_s25, %s823_s26  }
  0x12   :  { %817 = dma.done.wait [#allocation3], 1024  }
  0x13   :  { %818 = vsyncadd [#allocation3], 4294966272  ;;  %v40_v0 = vld [vmem:[%s1031_s1] sm:$0xff]  ;;  %v41_v1 = vld [vmem:[%s1031_s1 + $0x8] sm:$0xff]  ;;  %vm313_vm1 = vcmask 7168   ;;  %vm502_vm9 = vcmask 1041409  }
  0x14   :  { %v42_v2 = vld [vmem:[%s1031_s1 + $0x10] sm:$0xff]  ;;  %v662_v3 = vpack.c.bf16 %v41_v1, %v40_v0  ;;  %v43_v4 = vld [vmem:[%s1031_s1 + $0x18] sm:$0xff]  ;;  %v44_v6 = vld [vmem:[%s1031_s1 + $0x20] sm:$0xff]  ;;  %vm504_vm10 = vcmask 1042434   ;;  %vm506_vm11 = vcmask 1043459  }
  0x15   :  { %v666_v5 = vpack.c.bf16 %v43_v4, %v42_v2  ;;  %v45_v7 = vld [vmem:[%s1031_s1 + $0x28] sm:$0xff]  ;;  %v881_v9 = vld [vmem:[#allocation2] sm:$0xff]  ;;  %v46_v10 = vld [vmem:[%s1031_s1 + $0x30] sm:$0xff] }
  0x16   :  { %663 = vmatprep.subr.bf16.mxu0 %v662_v3  ;;  %v670_v8 = vpack.c.bf16 %v45_v7, %v44_v6  ;;  %v47_v11 = vld [vmem:[%s1031_s1 + $0x38] sm:$0xff]  ;;  %606 = vmatprep.mubr.f32.mxu0 %v881_v9  ;;  %v176_v12 = vld [vmem:[%s1033_s3] sm:$0xff]  ;;  %v177_v13 = vld [vmem:[%s1033_s3 + $0x8] sm:$0xff]  ;;  %vm297_vm2 = vcmp.ne.f32.partialorder %v881_v9, 0.0 }
  0x17   :  { %665 = vmatpush3.bf16.msra.mxu0 %v662_v3  ;;  %v178_v14 = vld [vmem:[%s1033_s3 + $0x10] sm:$0xff]  ;;  %v674_v15 = vpack.c.bf16 %v47_v11, %v46_v10  ;;  %v48_v16 = vld [vmem:[%s1031_s1 + $0x40] sm:$0xff]  ;;  %v694_v17 = vpack.c.bf16 %v177_v13, %v176_v12  ;;  %v179_v18 = vld [vmem:[%s1033_s3 + $0x18] sm:$0xff] }
  0x18   :  { %667 = vmatprep.subr.bf16.mxu0 %v666_v5  ;;  %v49_v19 = vld [vmem:[%s1031_s1 + $0x48] sm:$0xff]  ;;  %v698_v20 = vpack.c.bf16 %v179_v18, %v178_v14  ;;  %v180_v21 = vld [vmem:[%s1033_s3 + $0x20] sm:$0xff]  ;;  %v50_v24 = vld [vmem:[%s1031_s1 + $0x50] sm:$0xff]  ;;  %v824_v18 = vmov 0  }
  0x19   :  { %v181_v22 = vld [vmem:[%s1033_s3 + $0x28] sm:$0xff]  ;;  %695 = vmatprep.subr.bf16.mxu1 %v694_v17  ;;  %v678_v23 = vpack.c.bf16 %v49_v19, %v48_v16  ;;  %v51_v26 = vld [vmem:[%s1031_s1 + $0x58] sm:$0xff]  ;;  %v182_v27 = vld [vmem:[%s1033_s3 + $0x30] sm:$0xff]  ;;  %731 = vset.pattern.permute.xlu0 %v824_v18 }
  0x1a   :  { %697 = vmatpush3.bf16.msra.mxu1 %v694_v17  ;;  %v702_v25 = vpack.c.bf16 %v181_v22, %v180_v21  ;;  %v183_v28 = vld [vmem:[%s1033_s3 + $0x38] sm:$0xff]  ;;  %v682_v29 = vpack.c.bf16 %v51_v26, %v50_v24  ;;  %v52_v31 = vld [vmem:[%s1031_s1 + $0x60] sm:$0xff]  ;;  %v53_v32 = vld [vmem:[%s1031_s1 + $0x68] sm:$0xff]  ;;  %732 = vset.pattern.permute.xlu1 %v824_v18 }
  0x1b   :  { %669 = vmatpush3.bf16.msra.mxu0 %v666_v5  ;;  %699 = vmatprep.subr.bf16.mxu1 %v698_v20  ;;  %v706_v30 = vpack.c.bf16 %v183_v28, %v182_v27  ;;  %v686_v33 = vpack.c.bf16 %v53_v32, %v52_v31  ;;  %v54_v34 = vld [vmem:[%s1031_s1 + $0x70] sm:$0xff]  ;;  %v55_v35 = vld [vmem:[%s1031_s1 + $0x78] sm:$0xff]  ;;  %v938_v37 = vld [vmem:[#allocation2 + $0x8] sm:$0xff] }
  0x1c   :  { %671 = vmatprep.subr.bf16.mxu0 %v670_v8  ;;  %v690_v36 = vpack.c.bf16 %v55_v35, %v54_v34  ;;  %v940_v38 = vld [vmem:[#allocation2 + $0x10] sm:$0xff]  ;;  %v944_v39 = vld [vmem:[#allocation2 + $0x18] sm:$0xff]  ;;  %v946_v40 = vld [vmem:[#allocation2 + $0x20] sm:$0xff]  ;;  %vm298_vm0 = vcmp.ne.f32.partialorder %v938_v37, 0.0 }
  0x1d   :  { %v950_v41 = vld [vmem:[#allocation2 + $0x28] sm:$0xff]  ;;  %v952_v42 = vld [vmem:[#allocation2 + $0x30] sm:$0xff]  ;;  %v956_v43 = vld [vmem:[#allocation2 + $0x38] sm:$0xff]  ;;  %vm300_vm3 = vcmp.ne.f32.partialorder %v944_v39, 0.0  ;;  %vm299_vm4 = vcmp.ne.f32.partialorder %v940_v38, 0.0  ;;  %vm301_vm6 = vcmp.ne.f32.partialorder %v946_v40, 0.0 }
  0x1e   :  { %701 = vmatpush3.bf16.msra.mxu1 %v698_v20  ;;  %v184_v44 = vld [vmem:[%s1033_s3 + $0x40] sm:$0xff]  ;;  %v185_v45 = vld [vmem:[%s1033_s3 + $0x48] sm:$0xff]  ;;  %v186_v47 = vld [vmem:[%s1033_s3 + $0x50] sm:$0xff]  ;;  %vm302_vm5 = vcmp.ne.f32.partialorder %v950_v41, 0.0  ;;  %vm304_vm7 = vcmp.ne.f32.partialorder %v956_v43, 0.0  ;;  %vm303_vm8 = vcmp.ne.f32.partialorder %v952_v42, 0.0 }
  0x1f   :  { %673 = vmatpush3.bf16.msra.mxu0 %v670_v8  ;;  %703 = vmatprep.subr.bf16.mxu1 %v702_v25  ;;  %v710_v46 = vpack.c.bf16 %v185_v45, %v184_v44  ;;  %v187_v48 = vld [vmem:[%s1033_s3 + $0x58] sm:$0xff]  ;;  %v188_v50 = vld [vmem:[%s1033_s3 + $0x60] sm:$0xff]  ;;  %v189_v51 = vld [vmem:[%s1033_s3 + $0x68] sm:$0xff] }
  0x20   :  { %675 = vmatprep.subr.bf16.mxu0 %v674_v15  ;;  %v714_v49 = vpack.c.bf16 %v187_v48, %v186_v47  ;;  %v718_v52 = vpack.c.bf16 %v189_v51, %v188_v50  ;;  %v190_v53 = vld [vmem:[%s1033_s3 + $0x70] sm:$0xff]  ;;  %v191_v54 = vld [vmem:[%s1033_s3 + $0x78] sm:$0xff]  ;;  %v525_v56 = vld [vmem:[%s1032_s2] ss:$0 sm:$0xff]  ;;  %s825_s2 = smov [#allocation5]  }
  0x21   :  { %v722_v55 = vpack.c.bf16 %v191_v54, %v190_v53  ;;  %s516_s3 = sshll.u32 %s825_s2, 4  ;;  %s517_s3 = int_to_ptr.vmem [resolvable:$true] %s516_s3 }
  0x22   :  { %705 = vmatpush3.bf16.msra.mxu1 %v702_v25  ;;  %s795_s13 = scalar_lea.vmem %s517_s3, 64  ;;  %p800_p9 = scmp.lt.s32.totalorder %s517_s3, %s517_s3 }
  0x23   :  { %677 = vmatpush3.bf16.msra.mxu0 %v674_v15  ;;  %707 = vmatprep.subr.bf16.mxu1 %v706_v30  ;;  %p796_p8 = scmp.ne.s32.totalorder %s517_s3, %s795_s13  ;;  %p801_p10 = scmp.lt.s32.totalorder %s795_s13, %s795_s13 }
  0x24   :  { %679 = vmatprep.subr.bf16.mxu0 %v678_v23 }
  0x25   :  { %p802_p11 = por %p801_p10, %p800_p9 }
  0x26   :  { %709 = vmatpush3.bf16.msra.mxu1 %v706_v30 }
  0x27   :  { %681 = vmatpush3.bf16.msra.mxu0 %v678_v23  ;;  %711 = vmatprep.subr.bf16.mxu1 %v710_v46  ;;  %p803_p12 = pnand %p802_p11, %p796_p8 }
  0x28   :  { %683 = vmatprep.subr.bf16.mxu0 %v682_v29 }
  0x2a   :  { %713 = vmatpush3.bf16.msra.mxu1 %v710_v46 }
  0x2b   :  { %685 = vmatpush3.bf16.msra.mxu0 %v682_v29  ;;  %715 = vmatprep.subr.bf16.mxu1 %v714_v49 }
  0x2c   :  { %687 = vmatprep.subr.bf16.mxu0 %v686_v33 }
  0x2e   :  { %717 = vmatpush3.bf16.msra.mxu1 %v714_v49 }
  0x2f   :  { %689 = vmatpush3.bf16.msra.mxu0 %v686_v33  ;;  %719 = vmatprep.subr.bf16.mxu1 %v718_v52 }
  0x30   :  { %691 = vmatprep.subr.bf16.mxu0 %v690_v36 }
  0x32   :  { %721 = vmatpush3.bf16.msra.mxu1 %v718_v52 }
  0x33   :  { %693 = vmatpush3.bf16.msra.mxu0 %v690_v36  ;;  %723 = vmatprep.subr.bf16.mxu1 %v722_v55 }
  0x36   :  { %607 = vmatmul.mubr.f32.vlgmr.msra.gmra.mrb[0].mxu0 %v938_v37  ;;  %725 = vmatpush3.bf16.msra.mxu1 %v722_v55 }
  0x37   :  { %609 = vmatprep.mubr.f32.mxu0 %v940_v38 }
  0x3a   :  { %610 = vmatmul.mubr.f32.gmra.mrb[2].mxu0 %v944_v39 }
  0x3b   :  { %612 = vmatprep.mubr.f32.mxu0 %v946_v40 }
  0x3e   :  { %613 = vmatmul.mubr.f32.gmra.mrb[4].mxu0 %v950_v41 }
  0x3f   :  { %615 = vmatprep.mubr.f32.mxu0 %v952_v42 }
  0x42   :  { %616 = vmatmul.mubr.f32.gmra.mrb[6].mxu0 %v956_v43 }
 0x109   :  { %v608_v57 = vpop.f32.mrb[0].mxu0 }
 0x10a   :  { %v135_v58 = vadd.f32 %v608_v57, %v525_v56  ;;  %v129_v59 = vpop.f32.mrb[1].mxu0 }
 0x10b   :  { %v130_v60 = vadd.f32 %v525_v56, %v129_v59 }
 0x10d   :  { %733 = vtanh.f32 %v130_v60  ;;  %v611_v61 = vpop.f32.mrb[2].mxu0 }
 0x10e   :  { %735 = vtanh.f32 %v135_v58  ;;  %v145_v62 = vadd.f32 %v611_v61, %v525_v56  ;;  %v139_v63 = vpop.f32.mrb[3].mxu0 }
 0x10f   :  { %v140_v0 = vadd.f32 %v525_v56, %v139_v63 }
 0x111   :  { %737 = vtanh.f32 %v140_v0  ;;  %v614_v1 = vpop.f32.mrb[4].mxu0 }
 0x112   :  { %739 = vtanh.f32 %v145_v62  ;;  %v155_v2 = vadd.f32 %v614_v1, %v525_v56  ;;  %v149_v3 = vpop.f32.mrb[5].mxu0 }
 0x113   :  { %v150_v4 = vadd.f32 %v525_v56, %v149_v3 }
 0x114   :  { %741 = vtanh.f32 %v155_v2 }
 0x115   :  { %743 = vtanh.f32 %v150_v4  ;;  %v617_v5 = vpop.f32.mrb[6].mxu0 }
 0x116   :  { %v165_v6 = vadd.f32 %v617_v5, %v525_v56  ;;  %v159_v7 = vpop.f32.mrb[7].mxu0 }
 0x117   :  { %v734_v8 = vpop.eup %733  ;;  %v160_v10 = vadd.f32 %v525_v56, %v159_v7 }
 0x118   :  { %v736_v11 = vpop.eup %735  ;;  %745 = vtanh.f32 %v165_v6  ;;  %650 = vmatprep.mubr.f32.mxu1 %v734_v8 }
 0x119   :  { %747 = vtanh.f32 %v160_v10  ;;  %651 = vmatmul.mubr.f32.vlgmr.msra.gmra.mrb[0].mxu1 %v736_v11 }
 0x11b   :  { %v738_v12 = vpop.eup %737 }
 0x11c   :  { %v740_v13 = vpop.eup %739  ;;  %653 = vmatprep.mubr.f32.mxu1 %v738_v12 }
 0x11d   :  { %654 = vmatmul.mubr.f32.gmra.mrb[2].mxu1 %v740_v13 }
 0x11e   :  { %v742_v14 = vpop.eup %741 }
 0x11f   :  { %v744_v15 = vpop.eup %743 }
 0x120   :  { %656 = vmatprep.mubr.f32.mxu1 %v744_v15 }
 0x121   :  { %657 = vmatmul.mubr.f32.gmra.mrb[4].mxu1 %v742_v14 }
 0x122   :  { %v746_v16 = vpop.eup %745 }
 0x123   :  { %v748_v17 = vpop.eup %747 }
 0x124   :  { %659 = vmatprep.mubr.f32.mxu1 %v748_v17 }
 0x125   :  { %660 = vmatmul.mubr.f32.gmra.mrb[6].mxu1 %v746_v16 }
 0x1ec   :  { %v652_v19 = vpop.f32.mrb[0].mxu1 }
 0x1ed   :  { %v306_v20 = vsel %vm298_vm0, %v652_v19, -1e+32  ;;  %v258_v21 = vpop.f32.mrb[1].mxu1 }
 0x1ee   :  { %v315_v22 = vsel %vm313_vm1, %v306_v20, -inf  ;;  %v305_v23 = vsel %vm297_vm2, %v258_v21, -1e+32 }
 0x1ef   :  { %v314_v24 = vsel %vm313_vm1, %v305_v23, -inf }
 0x1f0   :  { %v316_v25 = vmax.f32 %v314_v24, %v315_v22  ;;  %v655_v26 = vpop.f32.mrb[2].mxu1 }
 0x1f1   :  { %v308_v27 = vsel %vm300_vm3, %v655_v26, -1e+32  ;;  %v268_v28 = vpop.f32.mrb[3].mxu1 }
 0x1f2   :  { %v317_v29 = vrot.slane %v316_v25, 4  ;;  %v324_v30 = vsel %vm313_vm1, %v308_v27, -inf  ;;  %v307_v31 = vsel %vm299_vm4, %v268_v28, -1e+32 }
 0x1f3   :  { %v323_v32 = vsel %vm313_vm1, %v307_v31, -inf }
 0x1f4   :  { %v318_v33 = vmax.f32 %v316_v25, %v317_v29  ;;  %v325_v34 = vmax.f32 %v323_v32, %v324_v30  ;;  %v658_v35 = vpop.f32.mrb[4].mxu1 }
 0x1f5   :  { %v310_v36 = vsel %vm302_vm5, %v658_v35, -1e+32  ;;  %v278_v44 = vpop.f32.mrb[5].mxu1 }
 0x1f6   :  { %v319_v45 = vrot.slane %v318_v33, 2  ;;  %v326_v46 = vrot.slane %v325_v34, 4  ;;  %v333_v47 = vsel %vm313_vm1, %v310_v36, -inf  ;;  %v309_v48 = vsel %vm301_vm6, %v278_v44, -1e+32 }
 0x1f7   :  { %v332_v49 = vsel %vm313_vm1, %v309_v48, -inf }
 0x1f8   :  { %v320_v50 = vmax.f32 %v318_v33, %v319_v45  ;;  %v327_v51 = vmax.f32 %v325_v34, %v326_v46  ;;  %v334_v52 = vmax.f32 %v332_v49, %v333_v47  ;;  %v661_v53 = vpop.f32.mrb[6].mxu1 }
 0x1f9   :  { %v312_v54 = vsel %vm304_vm7, %v661_v53, -1e+32  ;;  %v288_v55 = vpop.f32.mrb[7].mxu1 }
 0x1fa   :  { %v321_v56 = vrot.slane %v320_v50, 1  ;;  %v328_v57 = vrot.slane %v327_v51, 2  ;;  %v335_v58 = vrot.slane %v334_v52, 4  ;;  %v342_v59 = vsel %vm313_vm1, %v312_v54, -inf }
 0x1fb   :  { %v311_v60 = vsel %vm303_vm8, %v288_v55, -1e+32 }
 0x1fc   :  { %v322_v61 = vmax.f32 %v320_v50, %v321_v56  ;;  %v329_v62 = vmax.f32 %v327_v51, %v328_v57  ;;  %v336_v63 = vmax.f32 %v334_v52, %v335_v58  ;;  %v341_v0 = vsel %vm313_vm1, %v311_v60, -inf }
 0x1fd   :  { %v343_v1 = vmax.f32 %v341_v0, %v342_v59 }
 0x1fe   :  { %v350_v2 = vsub.f32 %v305_v23, %v322_v61  ;;  %v351_v3 = vsub.f32 %v306_v20, %v322_v61  ;;  %v330_v4 = vrot.slane %v329_v62, 1  ;;  %v337_v5 = vrot.slane %v336_v63, 2 }
 0x1ff   :  { %v344_v6 = vrot.slane %v343_v1, 4 }
 0x200   :  { %v358_v7 = vmul.f32 1.442695, %v350_v2  ;;  %v360_v8 = vmul.f32 1.442695, %v351_v3  ;;  %v331_v10 = vmax.f32 %v329_v62, %v330_v4  ;;  %v338_v11 = vmax.f32 %v336_v63, %v337_v5 }
 0x201   :  { %v345_v12 = vmax.f32 %v343_v1, %v344_v6 }
 0x202   :  { %749 = vpow2.f32 %v358_v7  ;;  %v352_v13 = vsub.f32 %v307_v31, %v331_v10  ;;  %v353_v14 = vsub.f32 %v308_v27, %v331_v10  ;;  %v339_v15 = vrot.slane %v338_v11, 1 }
 0x203   :  { %751 = vpow2.f32 %v360_v8  ;;  %v346_v16 = vrot.slane %v345_v12, 2 }
 0x204   :  { %v362_v17 = vmul.f32 1.442695, %v352_v13  ;;  %v364_v18 = vmul.f32 1.442695, %v353_v14  ;;  %v340_v19 = vmax.f32 %v338_v11, %v339_v15 }
 0x205   :  { %v347_v21 = vmax.f32 %v345_v12, %v346_v16 }
 0x206   :  { %753 = vpow2.f32 %v362_v17  ;;  %v354_v20 = vsub.f32 %v309_v48, %v340_v19  ;;  %v355_v22 = vsub.f32 %v310_v36, %v340_v19 }
 0x207   :  { %755 = vpow2.f32 %v364_v18  ;;  %v348_v23 = vrot.slane %v347_v21, 1 }
 0x208   :  { %v366_v24 = vmul.f32 1.442695, %v354_v20  ;;  %v368_v25 = vmul.f32 1.442695, %v355_v22 }
 0x209   :  { %v349_v26 = vmax.f32 %v347_v21, %v348_v23 }
 0x20a   :  { %757 = vpow2.f32 %v366_v24 }
 0x20b   :  { %759 = vpow2.f32 %v368_v25  ;;  %v356_v28 = vsub.f32 %v311_v60, %v349_v26  ;;  %v357_v29 = vsub.f32 %v312_v54, %v349_v26 }
 0x20c   :  { %v750_v27 = vpop.eup %749 }
 0x20d   :  { %v752_v30 = vpop.eup %751  ;;  %v374_v31 = vsel %vm313_vm1, %v750_v27, 0.0  ;;  %v370_v32 = vmul.f32 1.442695, %v356_v28  ;;  %v372_v33 = vmul.f32 1.442695, %v357_v29 }
 0x20e   :  { %v375_v34 = vsel %vm313_vm1, %v752_v30, 0.0 }
 0x20f   :  { %v376_v35 = vadd.f32 %v375_v34, %v374_v31  ;;  %761 = vpow2.f32 %v370_v32 }
 0x210   :  { %v754_v36 = vpop.eup %753  ;;  %763 = vpow2.f32 %v372_v33 }
 0x211   :  { %v756_v44 = vpop.eup %755  ;;  %v377_v45 = vrot.slane %v376_v35, 4  ;;  %v383_v46 = vsel %vm313_vm1, %v754_v36, 0.0 }
 0x212   :  { %v384_v47 = vsel %vm313_vm1, %v756_v44, 0.0 }
 0x213   :  { %v378_v48 = vadd.f32 %v377_v45, %v376_v35  ;;  %v385_v49 = vadd.f32 %v384_v47, %v383_v46 }
 0x214   :  { %v758_v50 = vpop.eup %757 }
 0x215   :  { %v760_v51 = vpop.eup %759  ;;  %v386_v52 = vrot.slane %v385_v49, 4  ;;  %v392_v53 = vsel %vm313_vm1, %v758_v50, 0.0  ;;  %v379_v54 = vrot.slane %v378_v48, 2 }
 0x216   :  { %v393_v55 = vsel %vm313_vm1, %v760_v51, 0.0 }
 0x217   :  { %v387_v56 = vadd.f32 %v386_v52, %v385_v49  ;;  %v394_v57 = vadd.f32 %v393_v55, %v392_v53  ;;  %v380_v58 = vadd.f32 %v379_v54, %v378_v48 }
 0x219   :  { %v762_v59 = vpop.eup %761  ;;  %v395_v60 = vrot.slane %v394_v57, 4  ;;  %v381_v61 = vrot.slane %v380_v58, 1  ;;  %v388_v62 = vrot.slane %v387_v56, 2 }
 0x21a   :  { %v764_v63 = vpop.eup %763  ;;  %v401_v0 = vsel %vm313_vm1, %v762_v59, 0.0 }
 0x21b   :  { %v396_v1 = vadd.f32 %v395_v60, %v394_v57  ;;  %v402_v2 = vsel %vm313_vm1, %v764_v63, 0.0  ;;  %v382_v3 = vadd.f32 %v381_v61, %v380_v58  ;;  %v389_v4 = vadd.f32 %v388_v62, %v387_v56 }
 0x21c   :  { %v403_v5 = vadd.f32 %v402_v2, %v401_v0 }
 0x21d   :  { %v397_v6 = vrot.slane %v396_v1, 2  ;;  %765 = vrcp.f32 %v382_v3  ;;  %v390_v7 = vrot.slane %v389_v4, 1 }
 0x21e   :  { %v404_v8 = vrot.slane %v403_v5, 4 }
 0x21f   :  { %v391_v10 = vadd.f32 %v390_v7, %v389_v4  ;;  %v398_v11 = vadd.f32 %v397_v6, %v396_v1 }
 0x220   :  { %v405_v12 = vadd.f32 %v404_v8, %v403_v5 }
 0x221   :  { %767 = vrcp.f32 %v391_v10  ;;  %v399_v13 = vrot.slane %v398_v11, 1 }
 0x222   :  { %v406_v14 = vrot.slane %v405_v12, 2 }
 0x223   :  { %v400_v15 = vadd.f32 %v399_v13, %v398_v11 }
 0x224   :  { %v407_v16 = vadd.f32 %v406_v14, %v405_v12 }
 0x225   :  { %769 = vrcp.f32 %v400_v15 }
 0x226   :  { %v408_v17 = vrot.slane %v407_v16, 1 }
 0x227   :  { %v766_v18 = vpop.eup %765 }
 0x228   :  { %v414_v19 = vmul.f32 %v766_v18, %v750_v27  ;;  %v415_v21 = vmul.f32 %v766_v18, %v752_v30  ;;  %v409_v20 = vadd.f32 %v408_v17, %v407_v16 }
 0x22a   :  { %424 = vperm.xlu0 %731, %v414_v19   ;;  %771 = vrcp.f32 %v409_v20 }
 0x22b   :  { %v768_v22 = vpop.eup %767 }
 0x22c   :  { %v416_v23 = vmul.f32 %v768_v22, %v754_v36  ;;  %v417_v24 = vmul.f32 %v768_v22, %v756_v44 }
 0x22e   :  { %429 = vperm.xlu0 %731, %v415_v21   ;;  %434 = vperm.xlu1 %732, %v416_v23  }
 0x22f   :  { %v770_v25 = vpop.eup %769 }
 0x230   :  { %v418_v26 = vmul.f32 %v770_v25, %v758_v50  ;;  %v419_v28 = vmul.f32 %v770_v25, %v760_v51 }
 0x232   :  { %439 = vperm.xlu1 %732, %v417_v24   ;;  %444 = vperm.xlu0 %731, %v418_v26  }
 0x234   :  { %v772_v29 = vpop.eup %771 }
 0x235   :  { %v420_v31 = vmul.f32 %v772_v29, %v762_v59  ;;  %v421_v32 = vmul.f32 %v772_v29, %v764_v63 }
 0x236   :  { %449 = vperm.xlu1 %732, %v419_v28  }
 0x237   :  { %454 = vperm.xlu0 %731, %v420_v31  }
 0x23a   :  { %459 = vperm.xlu1 %732, %v421_v32  }
 0x2a9   :  { %v425_v27 = vpop.permute.xlu0 %424 }
 0x2aa   :  { %v462_v34 = vmul.f32 %v425_v27, %v881_v9 }
 0x2ad   :  { %v430_v30 = vpop.permute.xlu0 %429  ;;  %v435_v33 = vpop.permute.xlu1 %434 }
 0x2ae   :  { %v463_v35 = vmul.f32 %v430_v30, %v938_v37  ;;  %v464_v47 = vmul.f32 %v435_v33, %v940_v38 }
 0x2b0   :  { %v470_v36 = vadd.f32 %v463_v35, %v462_v34 }
 0x2b1   :  { %v440_v44 = vpop.permute.xlu1 %439  ;;  %v445_v45 = vpop.permute.xlu0 %444 }
 0x2b2   :  { %v471_v46 = vrot.slane %v470_v36, 4  ;;  %v465_v48 = vmul.f32 %v440_v44, %v944_v39  ;;  %v466_v53 = vmul.f32 %v445_v45, %v946_v40 }
 0x2b4   :  { %v477_v49 = vadd.f32 %v465_v48, %v464_v47  ;;  %v472_v50 = vadd.f32 %v471_v46, %v470_v36 }
 0x2b5   :  { %v450_v51 = vpop.permute.xlu1 %449 }
 0x2b6   :  { %v478_v52 = vrot.slane %v477_v49, 4  ;;  %v467_v54 = vmul.f32 %v450_v51, %v950_v41  ;;  %v455_v55 = vpop.permute.xlu0 %454  ;;  %v473_v37 = vrot.slane %v472_v50, 2 }
 0x2b7   :  { %v468_v60 = vmul.f32 %v455_v55, %v952_v42 }
 0x2b8   :  { %v479_v9 = vadd.f32 %v478_v52, %v477_v49  ;;  %v484_v56 = vadd.f32 %v467_v54, %v466_v53  ;;  %v474_v63 = vadd.f32 %v473_v37, %v472_v50 }
 0x2b9   :  { %v460_v57 = vpop.permute.xlu1 %459 }
 0x2ba   :  { %v480_v58 = vrot.slane %v479_v9, 2  ;;  %v485_v59 = vrot.slane %v484_v56, 4  ;;  %v469_v38 = vmul.f32 %v460_v57, %v956_v43  ;;  %v475_v3 = vrot.slane %v474_v63, 1 }
 0x2bc   :  { %v481_v39 = vadd.f32 %v480_v58, %v479_v9  ;;  %v486_v61 = vadd.f32 %v485_v59, %v484_v56  ;;  %v491_v62 = vadd.f32 %v469_v38, %v468_v60  ;;  %v476_v10 = vadd.f32 %v475_v3, %v474_v63 }
 0x2be   :  { %v487_v0 = vrot.slane %v486_v61, 2  ;;  %v492_v1 = vrot.slane %v491_v62, 4  ;;  %v482_v40 = vrot.slane %v481_v39, 1 }
 0x2c0   :  { %v488_v2 = vadd.f32 %v487_v0, %v486_v61  ;;  %v493_v41 = vadd.f32 %v492_v1, %v491_v62  ;;  %v483_v6 = vadd.f32 %v482_v40, %v481_v39 }
 0x2c2   :  { %v489_v4 = vrot.slane %v488_v2, 1  ;;  %v494_v5 = vrot.slane %v493_v41, 2  ;;  %v503_v11 = vsel %vm502_vm9, %v483_v6, %v476_v10 }
 0x2c4   :  { %v495_v7 = vadd.f32 %v494_v5, %v493_v41  ;;  %v490_v8 = vadd.f32 %v489_v4, %v488_v2 }
 0x2c6   :  { %v496_v42 = vrot.slane %v495_v7, 1  ;;  %v505_v12 = vsel %vm504_vm10, %v490_v8, %v503_v11 }
 0x2c8   :  { %v497_v43 = vadd.f32 %v496_v42, %v495_v7 }
 0x2ca   :  { %v507_v13 = vsel %vm506_vm11, %v497_v43, %v505_v12 }
 0x2cb   :  { %509 = vst [vmem:[#allocation5] sm:$0xf] %v507_v13 }
 0x2cc   :  { %806 = shalt.err (!%p803_p12)
}
 0x2cd   :  { %s807_s16 = scalar_lea.hbm %s1034_s4, 64 }
 0x2ce   :  { %p808_p13 = scmp.ne.s32.totalorder %s1034_s4, %s807_s16  ;;  %p811_p0 = scmp.lt.u32.totalorder %s807_s16, %s1034_s4 }
 0x2d0   :  { %p813_p1 = pnand %p811_p0, %p808_p13 }
 0x2d2   :  { %816 = shalt.err (!%p813_p1)
}
 0x2d3   :  { %519 = dma.vmem_to_hbm [thread:$0]  %s517_s3, 64, %s1034_s4, [#allocation4]  }
 0x2d4   :  { %819 = dma.done.wait [#allocation4], 64  }
 0x2d5   :  { %820 = vsyncadd [#allocation4], 4294967232 }
 0x2d6   :  { %523 = vsyncpa [#allocation3], 1 }
 0x2d7   :  { %524 = vsyncpa [#allocation4], 1 }

</bundles_post_ra>
